<compile_context>
chip_gen: v7x
topology: tpu7x:2x2x1
jax: 0.10.0
libtpu: 0.0.40
codegen_flags: <defaults>
</compile_context>

<pallas_src>
import functools

import jax
import jax.numpy as jnp
import numpy as np
from jax.experimental import pallas as pl
from jax.experimental.pallas import tpu as pltpu


_LP = 8          # left/right zero-pad columns of the hidden scratch (aligned)
_BN_EPS = 1e-5


# ------------------------------------------------------------------ kernel ---

def _fused_ir_kernel(*refs, has_expand, stride, use_res, rc, rce):
    """One (batch image, output-row strip) of a fused InvertedResidual block.

    refs (in order):
      x_core : (1, TH*stride, W, Cin)  input rows of this strip (no halo)
      x_top  : (1, 1, W, Cin)          row above the strip (valid iff t > 0)
      x_bot  : (1, 1, W, Cin)          row below the strip (valid iff t < T-1)
      [w_exp : (Cin, hidden) bf16, b1 : (1, hidden)]      (only if has_expand)
      w_dw   : (3, 3, hidden) f32, b2 : (1, hidden)
      w_proj : (hidden, Cout) bf16, b3 : (1, Cout)
      o_ref  : (1, TH, Wo, Cout)
      hid    : (TH*stride + 2, W + 16, hidden) f32 scratch, data at cols [8, 8+W)
    BN scales are pre-folded into the conv weights; only biases are added here.
    rc / rce are the static per-chunk output / input row counts.
    """
    if has_expand:
        (x_core, x_top, x_bot, w_exp, b1, w_dw, b2, w_proj, b3, o_ref, hid) = refs
    else:
        (x_core, x_top, x_bot, w_dw, b2, w_proj, b3, o_ref, hid) = refs
        w_exp = b1 = None

    t = pl.program_id(1)
    th, wo, cout = o_ref.shape[1], o_ref.shape[2], o_ref.shape[3]
    core, w_in, cin = x_core.shape[1], x_core.shape[2], x_core.shape[3]
    hidden = hid.shape[2]
    f32 = jnp.float32

    def expand(v2d):
        """BN-folded 1x1 expand conv + bias + ReLU6 (bf16 MXU, f32 accum)."""
        if has_expand:
            h = jnp.dot(v2d.astype(w_exp.dtype), w_exp[...],
                        preferred_element_type=f32)
            return jnp.clip(h + b1[...], 0.0, 6.0)
        return v2d.astype(f32)

    # Zero only the narrow pad-column strips (aligned full-width stores); the
    # data rows/columns are always fully overwritten below -> no full memset.
    zpad = jnp.zeros((hid.shape[0], _LP, hidden), f32)
    hid[:, 0:_LP, :] = zpad
    if stride == 1:                       # right pad column is only read at stride 1
        hid[:, _LP + w_in:2 * _LP + w_in, :] = zpad

    # ---- stage 1: 1x1 expand for the strip's core rows, row-chunked so the
    # matmul result stays small; stored sublane-aligned at column offset _LP.
    @pl.loop(0, core // rce)
    def _(e):
        r0 = pl.multiple_of(e * rce, rce)
        xe = x_core[0, pl.ds(r0, rce), :, :]                   # (rce, W, Cin)
        he = expand(xe.reshape(rce * w_in, cin))
        hid[pl.ds(1 + r0, rce), _LP:_LP + w_in, :] = he.reshape(rce, w_in, hidden)

    # ---- halo rows: recompute the neighbouring strips' edge rows in-kernel
    # (the expanded activation never round-trips HBM); zero at image edges.
    @pl.when(t > 0)
    def _():
        hid[0, _LP:_LP + w_in, :] = expand(x_top[0, 0])

    @pl.when(t == 0)
    def _():
        hid[0, _LP:_LP + w_in, :] = jnp.zeros((w_in, hidden), f32)

    if stride == 1:                       # bottom halo row is never read at stride 2
        @pl.when(t < pl.num_programs(1) - 1)
        def _():
            hid[core + 1, _LP:_LP + w_in, :] = expand(x_bot[0, 0])

        @pl.when(t == pl.num_programs(1) - 1)
        def _():
            hid[core + 1, _LP:_LP + w_in, :] = jnp.zeros((w_in, hidden), f32)

    # ---- stage 2+3: 3x3 depthwise + bias + ReLU6, then 1x1 project + bias
    # (+ fused residual), chunked over output rows to keep values vreg-sized.
    w_dw_v = w_dw[...]                                         # (3, 3, hidden)
    b2_v = b2[0]
    b3_v = b3[...]

    @pl.loop(0, th // rc)
    def _(c):
        r0 = pl.multiple_of(c * rc, rc)
        acc = jnp.zeros((rc, wo, hidden), f32)
        for kh in range(3):
            for kw in range(3):
                if stride == 1:
                    tap = hid[pl.ds(r0 + kh, rc), pl.ds(_LP + kw - 1, wo), :]
                else:
                    tap = hid[pl.ds(stride * r0 + kh, rc, stride),
                              pl.ds(_LP + kw - 1, wo, stride), :]
                acc = acc + tap * w_dw_v[kh, kw]
        acc = jnp.clip(acc + b2_v, 0.0, 6.0)

        out = jnp.dot(acc.reshape(rc * wo, hidden).astype(w_proj.dtype),
                      w_proj[...], preferred_element_type=f32)
        out = out + b3_v
        if use_res:
            res = x_core[0, pl.ds(r0, rc), :, :].reshape(rc * wo, cin)
            out = out + res.astype(f32)
        o_ref[0, pl.ds(r0, rc), :, :] = out.reshape(rc, wo, cout).astype(o_ref.dtype)


# ----------------------------------------------------------------- sizing ----

def _device_vmem_profile():
    """(strip budget bytes, vmem_limit cap bytes), generation aware."""
    kind = ""
    try:
        kind = jax.devices()[0].device_kind.lower()
    except Exception:
        pass
    if "v7" in kind:
        return 16 * 2**20, 50 * 2**20     # 64 MiB/TC physical: leave headroom
    if "v5" in kind or "v6" in kind:
        return 24 * 2**20, 64 * 2**20     # 128 MiB physical VMEM
    return 8 * 2**20, 48 * 2**20          # unknown generation: conservative


def _pick_chunk_rows(rows, width, channels, budget_bytes):
    """Largest divisor of `rows` whose f32 (rows, width, channels) chunk fits."""
    best = 1
    for d in range(1, rows + 1):
        if rows % d == 0 and d * width * channels * 4 <= budget_bytes:
            best = d
    return best


def _auto_strip_rows(batch, h_out, w_in, cin, hidden, cout, stride, itemsize,
                     budget_bytes, has_expand):
    """Largest output-row strip that fits the budget; >=2 grid steps if batch=1."""
    wo = w_in // stride
    wt_bytes = 2 * ((cin * hidden * 2 if has_expand else 0)
                    + 9 * hidden * 4 + hidden * cout * 2
                    + 4 * (2 * hidden + cout))

    def fits(th):
        core = th * stride
        scratch = (core + 2) * (w_in + 2 * _LP) * hidden * 4
        io = 2 * ((core + 2) * w_in * cin + th * wo * cout) * itemsize
        return scratch + io + wt_bytes <= budget_bytes

    candidates = [th for th in range(1, h_out + 1)
                  if h_out % th == 0 and fits(th)]
    if not candidates:
        return 1
    min_strips = 2 if batch < 2 else 1     # keep both v7x TensorCores busy
    good = [th for th in candidates if h_out // th >= min_strips]
    return max(good) if good else max(candidates)


# ----------------------------------------------------------------- wrapper ---

def fused_inverted_residual_nhwc(x, fp, *, stride, use_res, strip_rows=None,
                                 max_chunk_bytes=128 * 1024):
    """x: (N, H, W, Cin) NHWC.  fp: BN-folded params.  Returns (N, Ho, Wo, Cout)."""
    N, H, W, Cin = x.shape
    has_expand = "w_exp" in fp
    hidden = fp["w_dw"].shape[-1]
    Cout = fp["w_proj"].shape[-1]
    assert stride in (1, 2)
    if stride == 2:
        assert H % 2 == 0 and W % 2 == 0, "even spatial dims required for stride 2"
    Ho, Wo = H // stride, W // stride

    budget, vmem_cap = _device_vmem_profile()
    if strip_rows is None:
        strip_rows = _auto_strip_rows(N, Ho, W, Cin, hidden, Cout, stride,
                                      x.dtype.itemsize, budget, has_expand)
    assert Ho % strip_rows == 0, "strip_rows must divide the output height"
    th = strip_rows
    core = th * stride
    T = Ho // th

    # in-kernel row-chunk sizes: keep per-chunk f32 values small (vreg friendly)
    rc = _pick_chunk_rows(th, Wo, hidden, max_chunk_bytes)
    rce = _pick_chunk_rows(core, W, hidden, max_chunk_bytes)

    in_specs = [
        pl.BlockSpec((1, core, W, Cin), lambda n, t: (n, t, 0, 0)),
        pl.BlockSpec((1, 1, W, Cin),
                     lambda n, t: (n, jnp.maximum(t * core - 1, 0), 0, 0)),
        pl.BlockSpec((1, 1, W, Cin),
                     lambda n, t: (n, jnp.minimum((t + 1) * core, H - 1), 0, 0)),
    ]
    args = [x, x, x]
    if has_expand:
        in_specs += [pl.BlockSpec((Cin, hidden), lambda n, t: (0, 0)),
                     pl.BlockSpec((1, hidden), lambda n, t: (0, 0))]
        args += [fp["w_exp"], fp["b1"]]
    in_specs += [pl.BlockSpec((3, 3, hidden), lambda n, t: (0, 0, 0)),
                 pl.BlockSpec((1, hidden), lambda n, t: (0, 0)),
                 pl.BlockSpec((hidden, Cout), lambda n, t: (0, 0)),
                 pl.BlockSpec((1, Cout), lambda n, t: (0, 0))]
    args += [fp["w_dw"], fp["b2"], fp["w_proj"], fp["b3"]]

    itm = x.dtype.itemsize
    scratch_bytes = (core + 2) * (W + 2 * _LP) * hidden * 4
    io_bytes = 2 * ((core + 2) * W * Cin + th * Wo * Cout) * itm
    wt_bytes = 2 * ((Cin * hidden * 2 if has_expand else 0)
                    + 9 * hidden * 4 + hidden * Cout * 2
                    + 4 * (2 * hidden + Cout))
    need = scratch_bytes + io_bytes + wt_bytes
    vmem_limit = int(min(vmem_cap, max(32 * 1024 * 1024, 2 * need)))

    return pl.pallas_call(
        functools.partial(_fused_ir_kernel, has_expand=has_expand,
                          stride=stride, use_res=use_res, rc=rc, rce=rce),
        out_shape=jax.ShapeDtypeStruct((N, Ho, Wo, Cout), x.dtype),
        grid=(N, T),
        in_specs=in_specs,
        out_specs=pl.BlockSpec((1, th, Wo, Cout), lambda n, t: (n, t, 0, 0)),
        scratch_shapes=[pltpu.VMEM((core + 2, W + 2 * _LP, hidden), jnp.float32)],
        compiler_params=pltpu.CompilerParams(
            dimension_semantics=("parallel", "parallel"),
            vmem_limit_bytes=vmem_limit),
    )(*args)


# ------------------------------------------------------------ module logic ---

def _fold_bn(gamma, beta, mean, var):
    scale = gamma / jnp.sqrt(var + _BN_EPS)
    bias = beta - mean * scale
    c = scale.shape[0]
    return (scale.reshape(1, c).astype(jnp.float32),
            bias.reshape(1, c).astype(jnp.float32))


def _fold_scales_into_weights(params, expand_ratio, compute_dtype=jnp.bfloat16):
    """Fold BN scales into the (bias-free) conv weights; cast matmul weights."""
    fp = {}
    if expand_ratio != 1:
        fp["w_exp"] = (params["w_exp"] * params["s1"]).astype(compute_dtype)
        fp["b1"] = params["b1"]
    fp["w_dw"] = (params["w_dw"] * params["s2"][0]).astype(jnp.float32)
    fp["b2"] = params["b2"]
    fp["w_proj"] = (params["w_proj"] * params["s3"]).astype(compute_dtype)
    fp["b3"] = params["b3"]
    return fp


def init_inverted_residual_params(key, inp, oup, expand_ratio):
    """Deterministic synthetic parameters (shapes follow the PyTorch __init__)."""
    hidden = int(round(inp * expand_ratio))
    ks = jax.random.split(key, 16)
    params = {"hidden": hidden}

    def bn_params(k0, k1, k2, k3, c):
        gamma = 1.0 + 0.1 * jax.random.normal(k0, (c,), jnp.float32)
        beta = 0.1 * jax.random.normal(k1, (c,), jnp.float32)
        mean = 0.05 * jax.random.normal(k2, (c,), jnp.float32)
        var = 0.5 + 0.5 * jnp.abs(jax.random.normal(k3, (c,), jnp.float32))
        return _fold_bn(gamma, beta, mean, var)

    if expand_ratio != 1:
        # torch Conv2d weight (hidden, inp, 1, 1) -> matmul weight (inp, hidden)
        params["w_exp"] = (jax.random.normal(ks[0], (inp, hidden), jnp.float32)
                           * (1.0 / np.sqrt(inp)))
        params["s1"], params["b1"] = bn_params(ks[1], ks[2], ks[3], ks[4], hidden)

    # torch depthwise weight (hidden, 1, 3, 3) -> (3, 3, hidden)
    params["w_dw"] = (jax.random.normal(ks[5], (3, 3, hidden), jnp.float32)
                      * (1.0 / 3.0))
    params["s2"], params["b2"] = bn_params(ks[6], ks[7], ks[8], ks[9], hidden)

    # torch Conv2d weight (oup, hidden, 1, 1) -> (hidden, oup)
    params["w_proj"] = (jax.random.normal(ks[10], (hidden, oup), jnp.float32)
                        * (1.0 / np.sqrt(hidden)))
    params["s3"], params["b3"] = bn_params(ks[11], ks[12], ks[13], ks[14], oup)
    return params


def inverted_residual_forward(params, x_nchw, *, inp, oup, stride, expand_ratio,
                              strip_rows=None, compute_dtype=jnp.bfloat16,
                              max_chunk_bytes=128 * 1024):
    """PyTorch-compatible NCHW edge wrapper around the NHWC fused kernel."""
    use_res = (stride == 1) and (inp == oup)
    x = jnp.transpose(x_nchw, (0, 2, 3, 1))          # NCHW -> NHWC (edge only)
    fp = _fold_scales_into_weights(params, expand_ratio, compute_dtype)
    y = fused_inverted_residual_nhwc(x, fp, stride=stride, use_res=use_res,
                                     strip_rows=strip_rows,
                                     max_chunk_bytes=max_chunk_bytes)
    return jnp.transpose(y, (0, 3, 1, 2))            # NHWC -> NCHW


# ---------------------------------------------------------------- reference --

def inverted_residual_reference(params, x_nchw, *, inp, oup, stride, expand_ratio,
                                compute_dtype=jnp.bfloat16):
    """Plain-JAX reference with the same BN folding / bf16 operand rounding."""
    use_res = (stride == 1) and (inp == oup)
    fp = _fold_scales_into_weights(params, expand_ratio, compute_dtype)
    x = jnp.transpose(x_nchw, (0, 2, 3, 1)).astype(jnp.float32)
    N, H, W, _ = x.shape
    Ho, Wo = H // stride, W // stride

    h = x
    if "w_exp" in fp:
        h = jnp.einsum("nhwc,cd->nhwd",
                       h.astype(compute_dtype).astype(jnp.float32),
                       fp["w_exp"].astype(jnp.float32), precision="highest")
        h = jnp.clip(h + fp["b1"][0], 0.0, 6.0)
    C = h.shape[-1]
    hp = jnp.pad(h, ((0, 0), (1, 1), (1, 1), (0, 0)))
    acc = jnp.zeros((N, Ho, Wo, C), jnp.float32)
    for kh in range(3):
        for kw in range(3):
            acc = acc + hp[:, kh:kh + H:stride, kw:kw + W:stride, :] * fp["w_dw"][kh, kw]
    acc = jnp.clip(acc + fp["b2"][0], 0.0, 6.0)
    out = jnp.einsum("nhwc,cd->nhwd",
                     acc.astype(compute_dtype).astype(jnp.float32),
                     fp["w_proj"].astype(jnp.float32), precision="highest")
    out = out + fp["b3"][0]
    if use_res:
        out = out + x
    return jnp.transpose(out, (0, 3, 1, 2))


# --------------------------------------------------------------------- main --

if __name__ == "__main__":
    key = jax.random.PRNGKey(0)
    k_in, k_p1, k_p2, k_p3 = jax.random.split(key, 4)

    def check(x, params, *, inp, oup, stride, expand_ratio, strip_rows, shape,
              max_chunk_bytes=128 * 1024):
        out = inverted_residual_forward(params, x, inp=inp, oup=oup,
                                        stride=stride, expand_ratio=expand_ratio,
                                        strip_rows=strip_rows,
                                        max_chunk_bytes=max_chunk_bytes)
        out = jax.block_until_ready(out)
        ref = inverted_residual_reference(params, x, inp=inp, oup=oup,
                                          stride=stride, expand_ratio=expand_ratio)
        np.testing.assert_allclose(np.asarray(out), np.asarray(ref),
                                   rtol=2e-2, atol=2e-2)
        assert out.shape == shape

    # Case 1: stride=1, inp == oup -> fused residual, expand_ratio=4.
    inp, oup = 8, 8
    x = jax.random.normal(k_in, (2, inp, 16, 16), jnp.float32)
    params = init_inverted_residual_params(k_p1, inp, oup, 4)
    # explicit 4-row strips (multi-strip halo path)
    check(x, params, inp=inp, oup=oup, stride=1, expand_ratio=4,
          strip_rows=4, shape=(2, oup, 16, 16))
    # auto strip selection (single strip, zero halos)
    check(x, params, inp=inp, oup=oup, stride=1, expand_ratio=4,
          strip_rows=None, shape=(2, oup, 16, 16))
    # force the in-kernel row-chunk loops to run with >1 chunk
    check(x, params, inp=inp, oup=oup, stride=1, expand_ratio=4,
          strip_rows=4, shape=(2, oup, 16, 16), max_chunk_bytes=4096)

    # Case 2: stride=2, no residual, expand_ratio=6 (strided depthwise taps).
    inp2, oup2 = 8, 16
    x2 = jax.random.normal(k_in, (2, inp2, 16, 16), jnp.float32)
    params2 = init_inverted_residual_params(k_p2, inp2, oup2, 6)
    check(x2, params2, inp=inp2, oup=oup2, stride=2, expand_ratio=6,
          strip_rows=4, shape=(2, oup2, 8, 8))

    # Case 3: expand_ratio=1 (no expand conv), stride=1, residual.
    inp3, oup3 = 16, 16
    x3 = jax.random.normal(k_in, (2, inp3, 16, 16), jnp.float32)
    params3 = init_inverted_residual_params(k_p3, inp3, oup3, 1)
    check(x3, params3, inp=inp3, oup=oup3, stride=1, expand_ratio=1,
          strip_rows=8, shape=(2, oup3, 16, 16))

    print("KERNEL_OK")
</pallas_src>

<mosaic_0001>
module attributes {stable_mosaic.version = 11 : i64} {
  func.func @_fused_ir_kernel(%arg0: i32, %arg1: i32, %arg2: memref<1x4x16x8xf32, #tpu.memory_space<vmem>>, %arg3: memref<1x1x16x8xf32, #tpu.memory_space<vmem>>, %arg4: memref<1x1x16x8xf32, #tpu.memory_space<vmem>>, %arg5: memref<8x32xbf16, #tpu.memory_space<vmem>>, %arg6: memref<1x32xf32, #tpu.memory_space<vmem>>, %arg7: memref<3x3x32xf32, #tpu.memory_space<vmem>>, %arg8: memref<1x32xf32, #tpu.memory_space<vmem>>, %arg9: memref<32x8xbf16, #tpu.memory_space<vmem>>, %arg10: memref<1x8xf32, #tpu.memory_space<vmem>>, %arg11: memref<1x4x16x8xf32, #tpu.memory_space<vmem>>, %arg12: memref<6x32x32xf32, #tpu.memory_space<vmem>>) attributes {dimension_semantics = [#tpu.dimension_semantics<parallel>, #tpu.dimension_semantics<parallel>], iteration_bounds = array<i64: 2, 4>, scalar_prefetch = 0 : i64, scratch_operands = 1 : i64, tpu.core_type = #tpu.core_type<tc>, window_params = [{transform_indices = @transform_0, window_bounds = array<i64: 1, 4, 16, 8>}, {transform_indices = @transform_1, window_bounds = array<i64: 1, 1, 16, 8>}, {transform_indices = @transform_2, window_bounds = array<i64: 1, 1, 16, 8>}, {pipeline_mode = #tpu.pipeline_mode<synchronous>, transform_indices = @transform_3, window_bounds = array<i64: 8, 32>}, {pipeline_mode = #tpu.pipeline_mode<synchronous>, transform_indices = @transform_4, window_bounds = array<i64: 1, 32>}, {pipeline_mode = #tpu.pipeline_mode<synchronous>, transform_indices = @transform_5, window_bounds = array<i64: 3, 3, 32>}, {pipeline_mode = #tpu.pipeline_mode<synchronous>, transform_indices = @transform_6, window_bounds = array<i64: 1, 32>}, {pipeline_mode = #tpu.pipeline_mode<synchronous>, transform_indices = @transform_7, window_bounds = array<i64: 32, 8>}, {pipeline_mode = #tpu.pipeline_mode<synchronous>, transform_indices = @transform_8, window_bounds = array<i64: 1, 8>}, {transform_indices = @transform_9, window_bounds = array<i64: 1, 4, 16, 8>}]} {
    %cst = arith.constant 0.000000e+00 : f32
    %0 = vector.broadcast %cst : f32 to vector<6x8x32xf32>
    %c0 = arith.constant 0 : index
    %c0_0 = arith.constant 0 : index
    %c0_1 = arith.constant 0 : index
    %1 = vector.load %arg12[%c0, %c0_0, %c0_1] : memref<6x32x32xf32, #tpu.memory_space<vmem>>, vector<6x8x32xf32>
    tpu.vector_store %arg12[%c0, %c0_0, %c0_1], %0 {strides = array<i32>} : memref<6x32x32xf32, #tpu.memory_space<vmem>>, vector<6x8x32xf32>,
    %c0_2 = arith.constant 0 : index
    %c24 = arith.constant 24 : index
    %c0_3 = arith.constant 0 : index
    %2 = vector.load %arg12[%c0_2, %c24, %c0_3] : memref<6x32x32xf32, #tpu.memory_space<vmem>>, vector<6x8x32xf32>
    tpu.vector_store %arg12[%c0_2, %c24, %c0_3], %0 {strides = array<i32>} : memref<6x32x32xf32, #tpu.memory_space<vmem>>, vector<6x8x32xf32>,
    %c0_i32 = arith.constant 0 : i32
    %c1_i32 = arith.constant 1 : i32
    %3 = arith.muli %c0_i32, %c1_i32 : i32
    %c0_i32_4 = arith.constant 0 : i32
    %4 = arith.addi %c0_i32_4, %3 : i32
    %c4_i32 = arith.constant 4 : i32
    %5 = arith.muli %4, %c4_i32 : i32
    %6 = tpu.assume_multiple %5, 4 : i32
    %c0_5 = arith.constant 0 : index
    %7 = arith.index_cast %6 : i32 to index
    %c0_6 = arith.constant 0 : index
    %c0_7 = arith.constant 0 : index
    %8 = vector.load %arg2[%c0_5, %7, %c0_6, %c0_7] : memref<1x4x16x8xf32, #tpu.memory_space<vmem>>, vector<1x4x16x8xf32>
    %9 = vector.shape_cast %8 : vector<1x4x16x8xf32> to vector<4x16x8xf32>
    %10 = vector.shape_cast %9 : vector<4x16x8xf32> to vector<64x8xf32>
    %11 = arith.truncf %10 : vector<64x8xf32> to vector<64x8xbf16>
    %c0_8 = arith.constant 0 : index
    %c0_9 = arith.constant 0 : index
    %12 = vector.load %arg5[%c0_8, %c0_9] : memref<8x32xbf16, #tpu.memory_space<vmem>>, vector<8x32xbf16>
    %cst_10 = arith.constant dense<0.000000e+00> : vector<64x32xf32>
    %13 = tpu.matmul %11, %12, %cst_10 {dimension_numbers = #tpu.dot_dimension_numbers<[1], [0], [0], [1], [0, 0, 1, 1], [], []>} : vector<64x8xbf16>, vector<8x32xbf16>, vector<64x32xf32> -> vector<64x32xf32>
    %c0_11 = arith.constant 0 : index
    %c0_12 = arith.constant 0 : index
    %14 = vector.load %arg6[%c0_11, %c0_12] : memref<1x32xf32, #tpu.memory_space<vmem>>, vector<1x32xf32>
    %15 = vector.broadcast %14 : vector<1x32xf32> to vector<64x32xf32>
    %16 = arith.addf %13, %15 : vector<64x32xf32>
    %cst_13 = arith.constant 0.000000e+00 : f32
    %cst_14 = arith.constant 6.000000e+00 : f32
    %17 = vector.broadcast %cst_13 : f32 to vector<64x32xf32>
    %18 = arith.maximumf %17, %16 : vector<64x32xf32>
    %19 = vector.broadcast %cst_14 : f32 to vector<64x32xf32>
    %20 = arith.minimumf %19, %18 : vector<64x32xf32>
    %21 = vector.shape_cast %20 : vector<64x32xf32> to vector<4x16x32xf32>
    %c1_i32_15 = arith.constant 1 : i32
    %22 = arith.addi %c1_i32_15, %6 : i32
    %23 = arith.index_cast %22 : i32 to index
    %c8 = arith.constant 8 : index
    %c0_16 = arith.constant 0 : index
    %24 = vector.load %arg12[%23, %c8, %c0_16] : memref<6x32x32xf32, #tpu.memory_space<vmem>>, vector<4x16x32xf32>
    tpu.vector_store %arg12[%23, %c8, %c0_16], %21 {strides = array<i32>} : memref<6x32x32xf32, #tpu.memory_space<vmem>>, vector<4x16x32xf32>,
    %c1_i32_17 = arith.constant 1 : i32
    %c0_i32_18 = arith.constant 0 : i32
    %25 = arith.cmpi sgt, %arg1, %c0_i32_18 : i32
    %26 = arith.extui %25 : i1 to i32
    %c0_i32_19 = arith.constant 0 : i32
    %27 = arith.cmpi ne, %26, %c0_i32_19 : i32
    scf.if %27 {
      %c0_73 = arith.constant 0 : index
      %c0_74 = arith.constant 0 : index
      %c0_75 = arith.constant 0 : index
      %c0_76 = arith.constant 0 : index
      %150 = vector.load %arg3[%c0_73, %c0_74, %c0_75, %c0_76] : memref<1x1x16x8xf32, #tpu.memory_space<vmem>>, vector<1x1x16x8xf32>
      %151 = vector.shape_cast %150 : vector<1x1x16x8xf32> to vector<16x8xf32>
      %152 = arith.truncf %151 : vector<16x8xf32> to vector<16x8xbf16>
      %c0_77 = arith.constant 0 : index
      %c0_78 = arith.constant 0 : index
      %153 = vector.load %arg5[%c0_77, %c0_78] : memref<8x32xbf16, #tpu.memory_space<vmem>>, vector<8x32xbf16>
      %cst_79 = arith.constant dense<0.000000e+00> : vector<16x32xf32>
      %154 = tpu.matmul %152, %153, %cst_79 {dimension_numbers = #tpu.dot_dimension_numbers<[1], [0], [0], [1], [0, 0, 1, 1], [], []>} : vector<16x8xbf16>, vector<8x32xbf16>, vector<16x32xf32> -> vector<16x32xf32>
      %c0_80 = arith.constant 0 : index
      %c0_81 = arith.constant 0 : index
      %155 = vector.load %arg6[%c0_80, %c0_81] : memref<1x32xf32, #tpu.memory_space<vmem>>, vector<1x32xf32>
      %156 = vector.broadcast %155 : vector<1x32xf32> to vector<16x32xf32>
      %157 = arith.addf %154, %156 : vector<16x32xf32>
      %cst_82 = arith.constant 0.000000e+00 : f32
      %cst_83 = arith.constant 6.000000e+00 : f32
      %158 = vector.broadcast %cst_82 : f32 to vector<16x32xf32>
      %159 = arith.maximumf %158, %157 : vector<16x32xf32>
      %160 = vector.broadcast %cst_83 : f32 to vector<16x32xf32>
      %161 = arith.minimumf %160, %159 : vector<16x32xf32>
      %c0_84 = arith.constant 0 : index
      %c8_85 = arith.constant 8 : index
      %c0_86 = arith.constant 0 : index
      %162 = vector.load %arg12[%c0_84, %c8_85, %c0_86] : memref<6x32x32xf32, #tpu.memory_space<vmem>>, vector<1x16x32xf32>
      %163 = vector.shape_cast %162 : vector<1x16x32xf32> to vector<16x32xf32>
      %164 = vector.shape_cast %161 : vector<16x32xf32> to vector<1x16x32xf32>
      tpu.vector_store %arg12[%c0_84, %c8_85, %c0_86], %164 {strides = array<i32>} : memref<6x32x32xf32, #tpu.memory_space<vmem>>, vector<1x16x32xf32>,
    } else {
    }
    %c0_i32_20 = arith.constant 0 : i32
    %28 = arith.cmpi eq, %arg1, %c0_i32_20 : i32
    %29 = arith.extui %28 : i1 to i32
    %c0_i32_21 = arith.constant 0 : i32
    %30 = arith.cmpi ne, %29, %c0_i32_21 : i32
    scf.if %30 {
      %cst_73 = arith.constant 0.000000e+00 : f32
      %150 = vector.broadcast %cst_73 : f32 to vector<16x32xf32>
      %c0_74 = arith.constant 0 : index
      %c8_75 = arith.constant 8 : index
      %c0_76 = arith.constant 0 : index
      %151 = vector.load %arg12[%c0_74, %c8_75, %c0_76] : memref<6x32x32xf32, #tpu.memory_space<vmem>>, vector<1x16x32xf32>
      %152 = vector.shape_cast %151 : vector<1x16x32xf32> to vector<16x32xf32>
      %153 = vector.shape_cast %150 : vector<16x32xf32> to vector<1x16x32xf32>
      tpu.vector_store %arg12[%c0_74, %c8_75, %c0_76], %153 {strides = array<i32>} : memref<6x32x32xf32, #tpu.memory_space<vmem>>, vector<1x16x32xf32>,
    } else {
    }
    %c3_i32 = arith.constant 3 : i32
    %31 = arith.cmpi slt, %arg1, %c3_i32 : i32
    %32 = arith.extui %31 : i1 to i32
    %c0_i32_22 = arith.constant 0 : i32
    %33 = arith.cmpi ne, %32, %c0_i32_22 : i32
    scf.if %33 {
      %c0_73 = arith.constant 0 : index
      %c0_74 = arith.constant 0 : index
      %c0_75 = arith.constant 0 : index
      %c0_76 = arith.constant 0 : index
      %150 = vector.load %arg4[%c0_73, %c0_74, %c0_75, %c0_76] : memref<1x1x16x8xf32, #tpu.memory_space<vmem>>, vector<1x1x16x8xf32>
      %151 = vector.shape_cast %150 : vector<1x1x16x8xf32> to vector<16x8xf32>
      %152 = arith.truncf %151 : vector<16x8xf32> to vector<16x8xbf16>
      %c0_77 = arith.constant 0 : index
      %c0_78 = arith.constant 0 : index
      %153 = vector.load %arg5[%c0_77, %c0_78] : memref<8x32xbf16, #tpu.memory_space<vmem>>, vector<8x32xbf16>
      %cst_79 = arith.constant dense<0.000000e+00> : vector<16x32xf32>
      %154 = tpu.matmul %152, %153, %cst_79 {dimension_numbers = #tpu.dot_dimension_numbers<[1], [0], [0], [1], [0, 0, 1, 1], [], []>} : vector<16x8xbf16>, vector<8x32xbf16>, vector<16x32xf32> -> vector<16x32xf32>
      %c0_80 = arith.constant 0 : index
      %c0_81 = arith.constant 0 : index
      %155 = vector.load %arg6[%c0_80, %c0_81] : memref<1x32xf32, #tpu.memory_space<vmem>>, vector<1x32xf32>
      %156 = vector.broadcast %155 : vector<1x32xf32> to vector<16x32xf32>
      %157 = arith.addf %154, %156 : vector<16x32xf32>
      %cst_82 = arith.constant 0.000000e+00 : f32
      %cst_83 = arith.constant 6.000000e+00 : f32
      %158 = vector.broadcast %cst_82 : f32 to vector<16x32xf32>
      %159 = arith.maximumf %158, %157 : vector<16x32xf32>
      %160 = vector.broadcast %cst_83 : f32 to vector<16x32xf32>
      %161 = arith.minimumf %160, %159 : vector<16x32xf32>
      %c5 = arith.constant 5 : index
      %c8_84 = arith.constant 8 : index
      %c0_85 = arith.constant 0 : index
      %162 = vector.load %arg12[%c5, %c8_84, %c0_85] : memref<6x32x32xf32, #tpu.memory_space<vmem>>, vector<1x16x32xf32>
      %163 = vector.shape_cast %162 : vector<1x16x32xf32> to vector<16x32xf32>
      %164 = vector.shape_cast %161 : vector<16x32xf32> to vector<1x16x32xf32>
      tpu.vector_store %arg12[%c5, %c8_84, %c0_85], %164 {strides = array<i32>} : memref<6x32x32xf32, #tpu.memory_space<vmem>>, vector<1x16x32xf32>,
    } else {
    }
    %c3_i32_23 = arith.constant 3 : i32
    %34 = arith.cmpi eq, %arg1, %c3_i32_23 : i32
    %35 = arith.extui %34 : i1 to i32
    %c0_i32_24 = arith.constant 0 : i32
    %36 = arith.cmpi ne, %35, %c0_i32_24 : i32
    scf.if %36 {
      %cst_73 = arith.constant 0.000000e+00 : f32
      %150 = vector.broadcast %cst_73 : f32 to vector<16x32xf32>
      %c5 = arith.constant 5 : index
      %c8_74 = arith.constant 8 : index
      %c0_75 = arith.constant 0 : index
      %151 = vector.load %arg12[%c5, %c8_74, %c0_75] : memref<6x32x32xf32, #tpu.memory_space<vmem>>, vector<1x16x32xf32>
      %152 = vector.shape_cast %151 : vector<1x16x32xf32> to vector<16x32xf32>
      %153 = vector.shape_cast %150 : vector<16x32xf32> to vector<1x16x32xf32>
      tpu.vector_store %arg12[%c5, %c8_74, %c0_75], %153 {strides = array<i32>} : memref<6x32x32xf32, #tpu.memory_space<vmem>>, vector<1x16x32xf32>,
    } else {
    }
    %c0_25 = arith.constant 0 : index
    %c0_26 = arith.constant 0 : index
    %c0_27 = arith.constant 0 : index
    %37 = vector.load %arg7[%c0_25, %c0_26, %c0_27] : memref<3x3x32xf32, #tpu.memory_space<vmem>>, vector<3x3x32xf32>
    %c0_28 = arith.constant 0 : index
    %c0_29 = arith.constant 0 : index
    %38 = vector.load %arg8[%c0_28, %c0_29] : memref<1x32xf32, #tpu.memory_space<vmem>>, vector<1x32xf32>
    %39 = vector.shape_cast %38 : vector<1x32xf32> to vector<32xf32>
    %c0_30 = arith.constant 0 : index
    %c0_31 = arith.constant 0 : index
    %40 = vector.load %arg10[%c0_30, %c0_31] : memref<1x8xf32, #tpu.memory_space<vmem>>, vector<1x8xf32>
    %c0_i32_32 = arith.constant 0 : i32
    %c1_i32_33 = arith.constant 1 : i32
    %41 = arith.muli %c0_i32_32, %c1_i32_33 : i32
    %c0_i32_34 = arith.constant 0 : i32
    %42 = arith.addi %c0_i32_34, %41 : i32
    %c4_i32_35 = arith.constant 4 : i32
    %43 = arith.muli %42, %c4_i32_35 : i32
    %44 = tpu.assume_multiple %43, 4 : i32
    %cst_36 = arith.constant 0.000000e+00 : f32
    %45 = vector.broadcast %cst_36 : f32 to vector<4x16x32xf32>
    %c0_i32_37 = arith.constant 0 : i32
    %46 = arith.addi %44, %c0_i32_37 : i32
    %47 = arith.index_cast %46 : i32 to index
    %c7 = arith.constant 7 : index
    %c0_38 = arith.constant 0 : index
    %48 = vector.load %arg12[%47, %c7, %c0_38] : memref<6x32x32xf32, #tpu.memory_space<vmem>>, vector<4x16x32xf32>
    %49 = vector.extract_strided_slice %37 {offsets = [0, 0, 0], sizes = [1, 1, 32], strides = [1, 1, 1]} : vector<3x3x32xf32> to vector<1x1x32xf32>
    %50 = vector.shape_cast %49 : vector<1x1x32xf32> to vector<32xf32>
    %51 = vector.shape_cast %50 : vector<32xf32> to vector<1x1x32xf32>
    %52 = vector.broadcast %51 : vector<1x1x32xf32> to vector<4x16x32xf32>
    %53 = arith.mulf %48, %52 : vector<4x16x32xf32>
    %54 = arith.addf %45, %53 : vector<4x16x32xf32>
    %c0_i32_39 = arith.constant 0 : i32
    %55 = arith.addi %44, %c0_i32_39 : i32
    %56 = arith.index_cast %55 : i32 to index
    %c8_40 = arith.constant 8 : index
    %c0_41 = arith.constant 0 : index
    %57 = vector.load %arg12[%56, %c8_40, %c0_41] : memref<6x32x32xf32, #tpu.memory_space<vmem>>, vector<4x16x32xf32>
    %58 = vector.extract_strided_slice %37 {offsets = [0, 1, 0], sizes = [1, 1, 32], strides = [1, 1, 1]} : vector<3x3x32xf32> to vector<1x1x32xf32>
    %59 = vector.shape_cast %58 : vector<1x1x32xf32> to vector<32xf32>
    %60 = vector.shape_cast %59 : vector<32xf32> to vector<1x1x32xf32>
    %61 = vector.broadcast %60 : vector<1x1x32xf32> to vector<4x16x32xf32>
    %62 = arith.mulf %57, %61 : vector<4x16x32xf32>
    %63 = arith.addf %54, %62 : vector<4x16x32xf32>
    %c0_i32_42 = arith.constant 0 : i32
    %64 = arith.addi %44, %c0_i32_42 : i32
    %65 = arith.index_cast %64 : i32 to index
    %c9 = arith.constant 9 : index
    %c0_43 = arith.constant 0 : index
    %66 = vector.load %arg12[%65, %c9, %c0_43] : memref<6x32x32xf32, #tpu.memory_space<vmem>>, vector<4x16x32xf32>
    %67 = vector.extract_strided_slice %37 {offsets = [0, 2, 0], sizes = [1, 1, 32], strides = [1, 1, 1]} : vector<3x3x32xf32> to vector<1x1x32xf32>
    %68 = vector.shape_cast %67 : vector<1x1x32xf32> to vector<32xf32>
    %69 = vector.shape_cast %68 : vector<32xf32> to vector<1x1x32xf32>
    %70 = vector.broadcast %69 : vector<1x1x32xf32> to vector<4x16x32xf32>
    %71 = arith.mulf %66, %70 : vector<4x16x32xf32>
    %72 = arith.addf %63, %71 : vector<4x16x32xf32>
    %c1_i32_44 = arith.constant 1 : i32
    %73 = arith.addi %44, %c1_i32_44 : i32
    %74 = arith.index_cast %73 : i32 to index
    %c7_45 = arith.constant 7 : index
    %c0_46 = arith.constant 0 : index
    %75 = vector.load %arg12[%74, %c7_45, %c0_46] : memref<6x32x32xf32, #tpu.memory_space<vmem>>, vector<4x16x32xf32>
    %76 = vector.extract_strided_slice %37 {offsets = [1, 0, 0], sizes = [1, 1, 32], strides = [1, 1, 1]} : vector<3x3x32xf32> to vector<1x1x32xf32>
    %77 = vector.shape_cast %76 : vector<1x1x32xf32> to vector<32xf32>
    %78 = vector.shape_cast %77 : vector<32xf32> to vector<1x1x32xf32>
    %79 = vector.broadcast %78 : vector<1x1x32xf32> to vector<4x16x32xf32>
    %80 = arith.mulf %75, %79 : vector<4x16x32xf32>
    %81 = arith.addf %72, %80 : vector<4x16x32xf32>
    %c1_i32_47 = arith.constant 1 : i32
    %82 = arith.addi %44, %c1_i32_47 : i32
    %83 = arith.index_cast %82 : i32 to index
    %c8_48 = arith.constant 8 : index
    %c0_49 = arith.constant 0 : index
    %84 = vector.load %arg12[%83, %c8_48, %c0_49] : memref<6x32x32xf32, #tpu.memory_space<vmem>>, vector<4x16x32xf32>
    %85 = vector.extract_strided_slice %37 {offsets = [1, 1, 0], sizes = [1, 1, 32], strides = [1, 1, 1]} : vector<3x3x32xf32> to vector<1x1x32xf32>
    %86 = vector.shape_cast %85 : vector<1x1x32xf32> to vector<32xf32>
    %87 = vector.shape_cast %86 : vector<32xf32> to vector<1x1x32xf32>
    %88 = vector.broadcast %87 : vector<1x1x32xf32> to vector<4x16x32xf32>
    %89 = arith.mulf %84, %88 : vector<4x16x32xf32>
    %90 = arith.addf %81, %89 : vector<4x16x32xf32>
    %c1_i32_50 = arith.constant 1 : i32
    %91 = arith.addi %44, %c1_i32_50 : i32
    %92 = arith.index_cast %91 : i32 to index
    %c9_51 = arith.constant 9 : index
    %c0_52 = arith.constant 0 : index
    %93 = vector.load %arg12[%92, %c9_51, %c0_52] : memref<6x32x32xf32, #tpu.memory_space<vmem>>, vector<4x16x32xf32>
    %94 = vector.extract_strided_slice %37 {offsets = [1, 2, 0], sizes = [1, 1, 32], strides = [1, 1, 1]} : vector<3x3x32xf32> to vector<1x1x32xf32>
    %95 = vector.shape_cast %94 : vector<1x1x32xf32> to vector<32xf32>
    %96 = vector.shape_cast %95 : vector<32xf32> to vector<1x1x32xf32>
    %97 = vector.broadcast %96 : vector<1x1x32xf32> to vector<4x16x32xf32>
    %98 = arith.mulf %93, %97 : vector<4x16x32xf32>
    %99 = arith.addf %90, %98 : vector<4x16x32xf32>
    %c2_i32 = arith.constant 2 : i32
    %100 = arith.addi %44, %c2_i32 : i32
    %101 = arith.index_cast %100 : i32 to index
    %c7_53 = arith.constant 7 : index
    %c0_54 = arith.constant 0 : index
    %102 = vector.load %arg12[%101, %c7_53, %c0_54] : memref<6x32x32xf32, #tpu.memory_space<vmem>>, vector<4x16x32xf32>
    %103 = vector.extract_strided_slice %37 {offsets = [2, 0, 0], sizes = [1, 1, 32], strides = [1, 1, 1]} : vector<3x3x32xf32> to vector<1x1x32xf32>
    %104 = vector.shape_cast %103 : vector<1x1x32xf32> to vector<32xf32>
    %105 = vector.shape_cast %104 : vector<32xf32> to vector<1x1x32xf32>
    %106 = vector.broadcast %105 : vector<1x1x32xf32> to vector<4x16x32xf32>
    %107 = arith.mulf %102, %106 : vector<4x16x32xf32>
    %108 = arith.addf %99, %107 : vector<4x16x32xf32>
    %c2_i32_55 = arith.constant 2 : i32
    %109 = arith.addi %44, %c2_i32_55 : i32
    %110 = arith.index_cast %109 : i32 to index
    %c8_56 = arith.constant 8 : index
    %c0_57 = arith.constant 0 : index
    %111 = vector.load %arg12[%110, %c8_56, %c0_57] : memref<6x32x32xf32, #tpu.memory_space<vmem>>, vector<4x16x32xf32>
    %112 = vector.extract_strided_slice %37 {offsets = [2, 1, 0], sizes = [1, 1, 32], strides = [1, 1, 1]} : vector<3x3x32xf32> to vector<1x1x32xf32>
    %113 = vector.shape_cast %112 : vector<1x1x32xf32> to vector<32xf32>
    %114 = vector.shape_cast %113 : vector<32xf32> to vector<1x1x32xf32>
    %115 = vector.broadcast %114 : vector<1x1x32xf32> to vector<4x16x32xf32>
    %116 = arith.mulf %111, %115 : vector<4x16x32xf32>
    %117 = arith.addf %108, %116 : vector<4x16x32xf32>
    %c2_i32_58 = arith.constant 2 : i32
    %118 = arith.addi %44, %c2_i32_58 : i32
    %119 = arith.index_cast %118 : i32 to index
    %c9_59 = arith.constant 9 : index
    %c0_60 = arith.constant 0 : index
    %120 = vector.load %arg12[%119, %c9_59, %c0_60] : memref<6x32x32xf32, #tpu.memory_space<vmem>>, vector<4x16x32xf32>
    %121 = vector.extract_strided_slice %37 {offsets = [2, 2, 0], sizes = [1, 1, 32], strides = [1, 1, 1]} : vector<3x3x32xf32> to vector<1x1x32xf32>
    %122 = vector.shape_cast %121 : vector<1x1x32xf32> to vector<32xf32>
    %123 = vector.shape_cast %122 : vector<32xf32> to vector<1x1x32xf32>
    %124 = vector.broadcast %123 : vector<1x1x32xf32> to vector<4x16x32xf32>
    %125 = arith.mulf %120, %124 : vector<4x16x32xf32>
    %126 = arith.addf %117, %125 : vector<4x16x32xf32>
    %127 = vector.shape_cast %39 : vector<32xf32> to vector<1x1x32xf32>
    %128 = vector.broadcast %127 : vector<1x1x32xf32> to vector<4x16x32xf32>
    %129 = arith.addf %126, %128 : vector<4x16x32xf32>
    %cst_61 = arith.constant 0.000000e+00 : f32
    %cst_62 = arith.constant 6.000000e+00 : f32
    %130 = vector.broadcast %cst_61 : f32 to vector<4x16x32xf32>
    %131 = arith.maximumf %130, %129 : vector<4x16x32xf32>
    %132 = vector.broadcast %cst_62 : f32 to vector<4x16x32xf32>
    %133 = arith.minimumf %132, %131 : vector<4x16x32xf32>
    %134 = vector.shape_cast %133 : vector<4x16x32xf32> to vector<64x32xf32>
    %135 = arith.truncf %134 : vector<64x32xf32> to vector<64x32xbf16>
    %c0_63 = arith.constant 0 : index
    %c0_64 = arith.constant 0 : index
    %136 = vector.load %arg9[%c0_63, %c0_64] : memref<32x8xbf16, #tpu.memory_space<vmem>>, vector<32x8xbf16>
    %cst_65 = arith.constant dense<0.000000e+00> : vector<64x8xf32>
    %137 = tpu.matmul %135, %136, %cst_65 {dimension_numbers = #tpu.dot_dimension_numbers<[1], [0], [0], [1], [0, 0, 1, 1], [], []>} : vector<64x32xbf16>, vector<32x8xbf16>, vector<64x8xf32> -> vector<64x8xf32>
    %138 = vector.broadcast %40 : vector<1x8xf32> to vector<64x8xf32>
    %139 = arith.addf %137, %138 : vector<64x8xf32>
    %c0_66 = arith.constant 0 : index
    %140 = arith.index_cast %44 : i32 to index
    %c0_67 = arith.constant 0 : index
    %c0_68 = arith.constant 0 : index
    %141 = vector.load %arg2[%c0_66, %140, %c0_67, %c0_68] : memref<1x4x16x8xf32, #tpu.memory_space<vmem>>, vector<1x4x16x8xf32>
    %142 = vector.shape_cast %141 : vector<1x4x16x8xf32> to vector<4x16x8xf32>
    %143 = vector.shape_cast %142 : vector<4x16x8xf32> to vector<64x8xf32>
    %144 = arith.addf %139, %143 : vector<64x8xf32>
    %145 = vector.shape_cast %144 : vector<64x8xf32> to vector<4x16x8xf32>
    %c0_69 = arith.constant 0 : index
    %146 = arith.index_cast %44 : i32 to index
    %c0_70 = arith.constant 0 : index
    %c0_71 = arith.constant 0 : index
    %147 = vector.load %arg11[%c0_69, %146, %c0_70, %c0_71] : memref<1x4x16x8xf32, #tpu.memory_space<vmem>>, vector<1x4x16x8xf32>
    %148 = vector.shape_cast %147 : vector<1x4x16x8xf32> to vector<4x16x8xf32>
    %149 = vector.shape_cast %145 : vector<4x16x8xf32> to vector<1x4x16x8xf32>
    tpu.vector_store %arg11[%c0_69, %146, %c0_70, %c0_71], %149 {strides = array<i32>} : memref<1x4x16x8xf32, #tpu.memory_space<vmem>>, vector<1x4x16x8xf32>,
    %c1_i32_72 = arith.constant 1 : i32
    return
  }
  func.func @transform_0(%arg0: i32, %arg1: i32) -> (i32, i32, i32, i32) {
    %c0_i32 = arith.constant 0 : i32
    %c0_i32_0 = arith.constant 0 : i32
    %c0_i32_1 = arith.constant 0 : i32
    return %arg0, %arg1, %c0_i32, %c0_i32_0 : i32, i32, i32, i32
  }
  func.func @transform_1(%arg0: i32, %arg1: i32) -> (i32, i32, i32, i32) {
    %c4_i32 = arith.constant 4 : i32
    %0 = arith.muli %arg1, %c4_i32 : i32
    %c1_i32 = arith.constant 1 : i32
    %1 = arith.subi %0, %c1_i32 : i32
    %c0_i32 = arith.constant 0 : i32
    %2 = arith.maxsi %1, %c0_i32 : i32
    %c0_i32_0 = arith.constant 0 : i32
    %c0_i32_1 = arith.constant 0 : i32
    %c0_i32_2 = arith.constant 0 : i32
    return %arg0, %2, %c0_i32_0, %c0_i32_1 : i32, i32, i32, i32
  }
  func.func @transform_2(%arg0: i32, %arg1: i32) -> (i32, i32, i32, i32) {
    %c1_i32 = arith.constant 1 : i32
    %0 = arith.addi %arg1, %c1_i32 : i32
    %c4_i32 = arith.constant 4 : i32
    %1 = arith.muli %0, %c4_i32 : i32
    %c15_i32 = arith.constant 15 : i32
    %2 = arith.minsi %1, %c15_i32 : i32
    %c0_i32 = arith.constant 0 : i32
    %c0_i32_0 = arith.constant 0 : i32
    %c0_i32_1 = arith.constant 0 : i32
    return %arg0, %2, %c0_i32, %c0_i32_0 : i32, i32, i32, i32
  }
  func.func @transform_3(%arg0: i32, %arg1: i32) -> (i32, i32) {
    %c0_i32 = arith.constant 0 : i32
    %c0_i32_0 = arith.constant 0 : i32
    %c0_i32_1 = arith.constant 0 : i32
    return %c0_i32, %c0_i32_0 : i32, i32
  }
  func.func @transform_4(%arg0: i32, %arg1: i32) -> (i32, i32) {
    %c0_i32 = arith.constant 0 : i32
    %c0_i32_0 = arith.constant 0 : i32
    %c0_i32_1 = arith.constant 0 : i32
    return %c0_i32, %c0_i32_0 : i32, i32
  }
  func.func @transform_5(%arg0: i32, %arg1: i32) -> (i32, i32, i32) {
    %c0_i32 = arith.constant 0 : i32
    %c0_i32_0 = arith.constant 0 : i32
    %c0_i32_1 = arith.constant 0 : i32
    %c0_i32_2 = arith.constant 0 : i32
    return %c0_i32, %c0_i32_0, %c0_i32_1 : i32, i32, i32
  }
  func.func @transform_6(%arg0: i32, %arg1: i32) -> (i32, i32) {
    %c0_i32 = arith.constant 0 : i32
    %c0_i32_0 = arith.constant 0 : i32
    %c0_i32_1 = arith.constant 0 : i32
    return %c0_i32, %c0_i32_0 : i32, i32
  }
  func.func @transform_7(%arg0: i32, %arg1: i32) -> (i32, i32) {
    %c0_i32 = arith.constant 0 : i32
    %c0_i32_0 = arith.constant 0 : i32
    %c0_i32_1 = arith.constant 0 : i32
    return %c0_i32, %c0_i32_0 : i32, i32
  }
  func.func @transform_8(%arg0: i32, %arg1: i32) -> (i32, i32) {
    %c0_i32 = arith.constant 0 : i32
    %c0_i32_0 = arith.constant 0 : i32
    %c0_i32_1 = arith.constant 0 : i32
    return %c0_i32, %c0_i32_0 : i32, i32
  }
  func.func @transform_9(%arg0: i32, %arg1: i32) -> (i32, i32, i32, i32) {
    %c0_i32 = arith.constant 0 : i32
    %c0_i32_0 = arith.constant 0 : i32
    %c0_i32_1 = arith.constant 0 : i32
    return %arg0, %arg1, %c0_i32, %c0_i32_0 : i32, i32, i32, i32
  }
}

</mosaic_0001>

<bundles_post_ra>
// kernel: tpu_custom_call.1
= control target key start
LH: loop header
LB: loop body
LE: loop exit
PB: predicated region body
PF: predicated region fallthrough
CT: control target
= control target key end

     0   :  { %s1629_s30 = smov 0   ;;  %s1631_s10 = smov 0   ;;  %s2055_s0 = inlined_call_operand.vmem [shape: f32[2,16,16,8], index: 0, kind: input, shape index: {}]   ;;  %s2056_s1 = inlined_call_operand.vmem [shape: f32[2,16,16,8], index: 1, kind: input, shape index: {}]   ;;  %s2057_s2 = inlined_call_operand.vmem [shape: f32[2,16,16,8], index: 2, kind: input, shape index: {}]   ;;  %s2058_s3 = inlined_call_operand.vmem [shape: bf16[8,32], index: 3, kind: input, shape index: {}]   ;;  %s2059_s4 = inlined_call_operand.vmem [shape: f32[1,32], index: 4, kind: input, shape index: {}]   ;;  %s2060_s5 = inlined_call_operand.vmem [shape: f32[3,3,32], index: 5, kind: input, shape index: {}]   ;;  %s2061_s6 = inlined_call_operand.vmem [shape: f32[1,32], index: 6, kind: input, shape index: {}]   ;;  %s2062_s7 = inlined_call_operand.vmem [shape: bf16[32,8], index: 7, kind: input, shape index: {}]   ;;  %s2063_s8 = inlined_call_operand.vmem [shape: f32[1,8], index: 8, kind: input, shape index: {}]   ;;  %s2064_s9 = inlined_call_operand.vmem [shape: f32[2,16,16,8], index: 9, kind: output, shape index: {}]  }
   0x1   :  { %2065 = sst [smem:[#allocation4_spill]] %s2055_s0  ;;  %s1633_s11 = smov 0  }
   0x2   :  { %2066 = sst [smem:[#allocation5_spill]] %s2064_s9  ;;  %s1635_s12 = smov 0  }
   0x3   :  { %s1637_s13 = smov 0  }
   0x4 LB: > { %s28_s14 = sadd.s32 1, %s1562_s11  ;;  %s31_s15 = sadd.s32 1, %s1566_s12  ;;  %s1570_s13 = sphi %s1637_s13, %s19_s13   ;;  %s1566_s12 = sphi %s1635_s12, %s2075_s12   ;;  %s1562_s11 = sphi %s1633_s11, %s2074_s11   ;;  %s1558_s10 = sphi %s1631_s10, %s2073_s10   ;;  %s1554_s30 = sphi %s1629_s30, %s2072_s30  }
   0x5   : > { %p29_p0 = scmp.ge.s32.totalorder %s28_s14, 4  ;;  %p1369_p1 = scmp.ge.s32.totalorder %s1570_s13, 1 }
   0x6   : > { %p373_p2 = scmp.lt.s32.totalorder %s1570_s13, 9 }
   0x7   : > { %s2077_s14 = smov (%p29_p0, %s28_s14), 0  ;;  %s2079_s15 = smov (!%p29_p0, %s31_s15), %s1566_s12 }
   0x8   : > { %p374_p3 = pnand %p1369_p1, %p373_p2  ;;  %p33_p4 = scmp.ge.s32.totalorder %s2079_s15, 2 }
   0x9   : > { %v529_v0 = vld [vmem:[%s2058_s3] sm:$0xf] (!%p374_p3)  ;;  %vm550_vm0 = vcmask (!%p374_p3), 1043456   ;;  %s1665_s18 = sshll.u32 (!%p374_p3), %s1554_s30, 2  ;;  %p446_p5 = scmp.lt.s32.totalorder (!%p374_p3), %s1558_s10, 1  ;;  %vm502_vm1 = vcmask (!%p374_p3), 261120  }
   0xa   : > { %s2081_s15 = smov (%p33_p4, %s2079_s15), 0  ;;  %377 = sbr.rel (%p374_p3) target bundleno = 991 (0x3df), region = 56 }
   0xb   : > { %2067 = sst [smem:[#allocation3_spill]] %s2081_s15  ;;  %1481 = vmatprep.subr.msk.bf16.mxu0 (!%p374_p3), %vm550_vm0, %v529_v0  ;;  %1482 = vmatprep.subr.msk.bf16.mxu1 (!%p374_p3), %vm550_vm0, %v529_v0  ;;  %v552_v1 = vsel (!%p374_p3), %vm550_vm0, %v529_v0, 0  ;;  %p448_p6 = scmp.lt.s32.totalorder (!%p374_p3), %s1665_s18, 15  ;;  %v1572_v2 = vmov (!%p374_p3), 0.0   ;;  %vm537_vm2 = vcmask (!%p374_p3), 64512  }
   0xc   : > { %s1672_s19 = sadd.s32 (!%p374_p3), 4294967295, %s1665_s18  ;;  %1442 = vmatpush3.bf16.msra.mxu0 (!%p374_p3), %v552_v1  ;;  %1476 = vmatpush3.bf16.msra.mxu1 (!%p374_p3), %v552_v1  ;;  %503 = vst.msk [vmem:[#allocation2] sm:$0xff] (!%p374_p3), %vm502_vm1, %v1572_v2  ;;  %504 = vst.msk [vmem:[#allocation2 + $0x20] sm:$0xff] (!%p374_p3), %vm502_vm1, %v1572_v2  ;;  %s1425_s24 = sadd.s32 (!%p374_p3), 4, %s1665_s18  ;;  %v1395_v15 = vld [vmem:[%s2059_s4] ss:$0 sm:$0xff] (!%p374_p3) }
   0xd   : > { %505 = vst.msk [vmem:[#allocation2 + $0x40] sm:$0xff] (!%p374_p3), %vm502_vm1, %v1572_v2  ;;  %506 = vst.msk [vmem:[#allocation2 + $0x60] sm:$0xff] (!%p374_p3), %vm502_vm1, %v1572_v2  ;;  %p458_p7 = scmp.gt.s32.totalorder (!%p374_p3), %s1672_s19, 0  ;;  %p1376_p8 = scmp.lt.s32.totalorder (!%p374_p3), %s1672_s19, 15 }
   0xe   : > { %507 = vst.msk [vmem:[#allocation2 + $0x80] sm:$0xff] (!%p374_p3), %vm502_vm1, %v1572_v2  ;;  %508 = vst.msk [vmem:[#allocation2 + $0xa0] sm:$0xff] (!%p374_p3), %vm502_vm1, %v1572_v2  ;;  %p1695_p9 = scmp.lt.s32.totalorder (!%p374_p3), %s1425_s24, 15  ;;  %s2069_s0 = sld [smem:[#allocation4_spill]] (!%p374_p3) }
   0xf   : > { %509 = vst.msk [vmem:[#allocation2 + $0x18] sm:$0xff] (!%p374_p3), %vm502_vm1, %v1572_v2  ;;  %510 = vst.msk [vmem:[#allocation2 + $0x38] sm:$0xff] (!%p374_p3), %vm502_vm1, %v1572_v2  ;;  %s2070_s9 = sld [smem:[#allocation5_spill]] (!%p374_p3)  ;;  %p1400_p10 = scmp.le.s32.totalorder (!%p374_p3), %s1554_s30, 0 }
  0x10   : > { %511 = vst.msk [vmem:[#allocation2 + $0x58] sm:$0xff] (!%p374_p3), %vm502_vm1, %v1572_v2  ;;  %512 = vst.msk [vmem:[#allocation2 + $0x78] sm:$0xff] (!%p374_p3), %vm502_vm1, %v1572_v2 }
  0x11   : > { %s2083_s10 = smov (!%p446_p5, %s1558_s10), 1  ;;  %513 = vst.msk [vmem:[#allocation2 + $0x98] sm:$0xff] %vm502_vm1, %v1572_v2  ;;  %514 = vst.msk [vmem:[#allocation2 + $0xb8] sm:$0xff] %vm502_vm1, %v1572_v2  ;;  %s2085_s24 = smov (!%p1695_p9, %s1425_s24), 15 }
  0x12   : > { %s449_s20 = scalar_select %p448_p6, %s1665_s18, 15 }
  0x13   : > { %s1689_s21 = sshll.u32 %s2083_s10, 5  ;;  %s2089_s24 = smov (!%p1695_p9, %s2085_s24), 15  ;;  %v653_v48 = vld [vmem:[%s2058_s3] sm:$0xf] (!%p1400_p10)  ;;  %v1573_v51 = vmov (!%p1400_p10), 0.0   ;;  %vm1574_vm3 = vmmov (!%p1400_p10), 0  }
  0x14   : > { %s1371_s22 = sshll.u32 %s449_s20, 1  ;;  %1451 = vmatprep.subr.bf16.mxu0 (!%p1400_p10), %v1573_v51  ;;  %v665_v52 = vsel (!%p1400_p10), %vm550_vm0, %v653_v48, 0  ;;  %v1401_v54 = vld [vmem:[%s2059_s4] ss:$0 sm:$0xff] (!%p1400_p10) }
  0x15   : > { %s452_s23 = sadd.s32 %s1689_s21, %s1371_s22 }
  0x16   : > { %s1373_s25 = sshll.u32 %s452_s23, 3  ;;  %s1388_s23 = sshll.u32 %s2089_s24, 1 }
  0x17   : > { %s1702_s29 = scalar_lea.vmem %s2069_s0, %s1373_s25  ;;  %s1707_s17 = scalar_lea.vmem %s2070_s9, %s1373_s25 }
  0x18   : > { %s459_s18 = scalar_select %p458_p7, %s1672_s19, 0  ;;  %v517_v3 = vld [vmem:[%s1702_s29] sm:$0xff]  ;;  %v518_v4 = vld [vmem:[%s1702_s29 + $0x8] sm:$0xff]  ;;  %v519_v8 = vld [vmem:[%s1702_s29 + $0x10] sm:$0xff] }
  0x19   : > { %v521_v5 = vld [vmem:[%s1702_s29 + $0x20] sm:$0xff]  ;;  %v525_v6 = vpack.c.bf16 %v518_v4, %v517_v3  ;;  %v522_v7 = vld [vmem:[%s1702_s29 + $0x28] sm:$0xff]  ;;  %v520_v9 = vld [vmem:[%s1702_s29 + $0x18] sm:$0xff]  ;;  %s483_s25 = sadd.s32 %s1388_s23, %s1689_s21 }
  0x1a   : > { %s2087_s18 = smov (!%p1376_p8, %s459_s18), 15  ;;  %v527_v10 = vpack.c.bf16 %v522_v7, %v521_v5  ;;  %v526_v11 = vpack.c.bf16 %v520_v9, %v519_v8  ;;  %v523_v12 = vld [vmem:[%s1702_s29 + $0x30] sm:$0xff]  ;;  %v524_v13 = vld [vmem:[%s1702_s29 + $0x38] sm:$0xff]  ;;  %s1390_s26 = sshll.u32 %s483_s25, 3 }
  0x1b   : > { %1443 = vmatprep.mubr.msk.bf16.mxu0 %vm537_vm2, %v525_v6  ;;  %v528_v14 = vpack.c.bf16 %v524_v13, %v523_v12  ;;  %s1381_s20 = sshll.u32 %s2087_s18, 1  ;;  %s1738_s18 = scalar_lea.vmem %s2057_s2, %s1390_s26 }
  0x1c   : > { %1447 = vmatprep.mubr.msk.bf16.mxu1 %vm537_vm2, %v527_v10  ;;  %1444 = vmatmul.mubr.msk.bf16.vlgmr.msra.gmra.mrb[0].mxu0 %vm537_vm2, %v526_v11  ;;  %s466_s22 = sadd.s32 %s1381_s20, %s1689_s21 }
  0x1d   : > { %1448 = vmatmul.mubr.msk.bf16.vlgmr.msra.gmra.mrb[0].mxu1 %vm537_vm2, %v528_v14  ;;  %s1383_s19 = sshll.u32 %s466_s22, 3  ;;  %1453 = vmatprep.mubr.msk.bf16.mxu0 (!%p1400_p10), %vm1574_vm3, %v1573_v51 }
  0x1e   : > { %s1733_s10 = scalar_lea.vmem %s2056_s1, %s1383_s19  ;;  %1452 = vmatpush3.bf16.msra.mxu0 (!%p1400_p10), %v665_v52 }
  0x1f   : > { %v650_v49 = vld [vmem:[%s1733_s10] sm:$0xff] (!%p1400_p10)  ;;  %v651_v50 = vld [vmem:[%s1733_s10 + $0x8] sm:$0xff] (!%p1400_p10) }
  0x20   : > { %v652_v53 = vpack.c.bf16 (!%p1400_p10), %v651_v50, %v650_v49 }
  0xef   : > { %v1445_v16 = vpop.f32.mrb[0].mxu0 }
  0xf0   : > { %v597_v17 = vadd.f32 %v1445_v16, %v1395_v15  ;;  %v1449_v18 = vpop.f32.mrb[0].mxu1  ;;  %v588_v19 = vpop.f32.mrb[1].mxu0 }
  0xf1   : > { %v613_v20 = vadd.f32 %v1449_v18, %v1395_v15  ;;  %v589_v21 = vadd.f32 %v1395_v15, %v588_v19  ;;  %v604_v22 = vpop.f32.mrb[1].mxu1  ;;  %v1446_v23 = vpop.f32.mrb[2].mxu0 }
  0xf2   : > { %v621_v24 = vmax.f32 %v597_v17, 0.0  ;;  %v605_v25 = vadd.f32 %v1395_v15, %v604_v22  ;;  %v600_v26 = vadd.f32 %v1446_v23, %v1395_v15  ;;  %v1450_v27 = vpop.f32.mrb[2].mxu1  ;;  %v591_v28 = vpop.f32.mrb[3].mxu0  ;;  %1454 = vmatmul.mubr.msk.bf16.vlgmr.msra.gmra.mrb[0].mxu0 (!%p1400_p10), %vm537_vm2, %v652_v53 }
  0xf3   : > { %v625_v29 = vmax.f32 %v613_v20, 0.0  ;;  %v619_v30 = vmax.f32 %v589_v21, 0.0  ;;  %v616_v31 = vadd.f32 %v1450_v27, %v1395_v15  ;;  %v592_v32 = vadd.f32 %v1395_v15, %v591_v28  ;;  %v607_v33 = vpop.f32.mrb[3].mxu1 }
  0xf4   : > { %v629_v34 = vmin.f32 %v621_v24, 6.0  ;;  %v623_v35 = vmax.f32 %v605_v25, 0.0  ;;  %v622_v36 = vmax.f32 %v600_v26, 0.0  ;;  %v608_v37 = vadd.f32 %v1395_v15, %v607_v33  ;;  %649 = sbr.rel (%p1400_p10) target bundleno = 463 (0x1cf), region = 60 }
  0xf5   : > { %v633_v38 = vmin.f32 %v625_v29, 6.0  ;;  %v627_v39 = vmin.f32 %v619_v30, 6.0  ;;  %v626_v40 = vmax.f32 %v616_v31, 0.0  ;;  %v620_v41 = vmax.f32 %v592_v32, 0.0 }
  0xf6   : > { %640 = vst.msk [vmem:[#allocation2 + $0x48] sm:$0xff] %vm502_vm1, %v629_v34  ;;  %v631_v42 = vmin.f32 %v623_v35, 6.0  ;;  %v630_v43 = vmin.f32 %v622_v36, 6.0  ;;  %v624_v44 = vmax.f32 %v608_v37, 0.0 }
  0xf7   : > { %644 = vst.msk [vmem:[#allocation2 + $0x88] sm:$0xff] %vm502_vm1, %v633_v38  ;;  %638 = vst.msk [vmem:[#allocation2 + $0x28] sm:$0xff] %vm502_vm1, %v627_v39  ;;  %v634_v45 = vmin.f32 %v626_v40, 6.0  ;;  %v628_v46 = vmin.f32 %v620_v41, 6.0 }
  0xf8   : > { %642 = vst.msk [vmem:[#allocation2 + $0x68] sm:$0xff] %vm502_vm1, %v631_v42  ;;  %641 = vst.msk [vmem:[#allocation2 + $0x50] sm:$0xff] %vm502_vm1, %v630_v43  ;;  %v632_v47 = vmin.f32 %v624_v44, 6.0 }
  0xf9   : > { %645 = vst.msk [vmem:[#allocation2 + $0x90] sm:$0xff] %vm502_vm1, %v634_v45  ;;  %639 = vst.msk [vmem:[#allocation2 + $0x30] sm:$0xff] %vm502_vm1, %v628_v46 }
  0xfa   : > { %643 = vst.msk [vmem:[#allocation2 + $0x70] sm:$0xff] %vm502_vm1, %v632_v47 }
 0x1c5   : > { %v701_v55 = vpop.f32.mrb[0].mxu0 }
 0x1c6   : > { %v702_v56 = vadd.f32 %v1401_v54, %v701_v55  ;;  %v1455_v57 = vpop.f32.mrb[1].mxu0 }
 0x1c7   : > { %v704_v58 = vpop.f32.mrb[2].mxu0 }
 0x1c8   : > { %v708_v59 = vmax.f32 %v702_v56, 0.0  ;;  %v705_v60 = vadd.f32 %v1401_v54, %v704_v58  ;;  %v1456_v61 = vpop.f32.mrb[3].mxu0 }
 0x1ca   : > { %v710_v62 = vmin.f32 %v708_v59, 6.0  ;;  %v709_v63 = vmax.f32 %v705_v60, 0.0 }
 0x1cc   : > { %712 = vst.msk [vmem:[#allocation2 + $0x8] sm:$0xff] %vm502_vm1, %v710_v62  ;;  %v711_v0 = vmin.f32 %v709_v63, 6.0 }
 0x1ce   : > { %713 = vst.msk [vmem:[#allocation2 + $0x10] sm:$0xff] %vm502_vm1, %v711_v0 }
 0x1cf PF: > { %p1403_p11 = scmp.ne.s32.totalorder %s1554_s30, 0 }
 0x1d0   : > { %v1575_v1 = vmov (!%p1403_p11), 0.0  }
 0x1d1   : > { %717 = sbr.rel (%p1403_p11) target bundleno = 472 (0x1d8), region = 64  ;;  %718 = vst.msk [vmem:[#allocation2 + $0x8] sm:$0xff] (!%p1403_p11), %vm502_vm1, %v1575_v1  ;;  %719 = vst.msk [vmem:[#allocation2 + $0x10] sm:$0xff] (!%p1403_p11), %vm502_vm1, %v1575_v1 }
 0x1d8 PF: > { %p1404_p12 = scmp.ge.s32.totalorder %s1554_s30, 3 }
 0x1d9   : > { %v727_v2 = vld [vmem:[%s2058_s3] sm:$0xf] (!%p1404_p12)  ;;  %v725_v4 = vld [vmem:[%s1738_s18 + $0x8] sm:$0xff] (!%p1404_p12)  ;;  %v1576_v5 = vmov (!%p1404_p12), 0.0   ;;  %vm1577_vm4 = vmmov (!%p1404_p12), 0  }
 0x1da   : > { %723 = sbr.rel (%p1404_p12) target bundleno = 699 (0x2bb), region = 68  ;;  %v724_v3 = vld [vmem:[%s1738_s18] sm:$0xff] (!%p1404_p12)  ;;  %1457 = vmatprep.subr.bf16.mxu0 (!%p1404_p12), %v1576_v5  ;;  %v739_v6 = vsel (!%p1404_p12), %vm550_vm0, %v727_v2, 0  ;;  %1459 = vmatprep.mubr.msk.bf16.mxu0 (!%p1404_p12), %vm1577_vm4, %v1576_v5 }
 0x1db   : > { %v726_v7 = vpack.c.bf16 (!%p1404_p12), %v725_v4, %v724_v3  ;;  %1458 = vmatpush3.bf16.msra.mxu0 (!%p1404_p12), %v739_v6  ;;  %v1405_v8 = vld [vmem:[%s2059_s4] ss:$0 sm:$0xff] (!%p1404_p12) }
 0x1de   : > { %1460 = vmatmul.mubr.msk.bf16.vlgmr.msra.gmra.mrb[0].mxu0 (!%p1404_p12), %vm537_vm2, %v726_v7 }
 0x2b1   : > { %v775_v9 = vpop.f32.mrb[0].mxu0 }
 0x2b2   : > { %v776_v10 = vadd.f32 %v1405_v8, %v775_v9  ;;  %v1461_v11 = vpop.f32.mrb[1].mxu0 }
 0x2b3   : > { %v778_v12 = vpop.f32.mrb[2].mxu0 }
 0x2b4   : > { %v782_v13 = vmax.f32 %v776_v10, 0.0  ;;  %v779_v14 = vadd.f32 %v1405_v8, %v778_v12  ;;  %v1462_v15 = vpop.f32.mrb[3].mxu0 }
 0x2b6   : > { %v784_v16 = vmin.f32 %v782_v13, 6.0  ;;  %v783_v17 = vmax.f32 %v779_v14, 0.0 }
 0x2b8   : > { %787 = vst.msk [vmem:[#allocation2 + $0xa8] sm:$0xff] %vm502_vm1, %v784_v16  ;;  %v785_v18 = vmin.f32 %v783_v17, 6.0 }
 0x2ba   : > { %788 = vst.msk [vmem:[#allocation2 + $0xb0] sm:$0xff] %vm502_vm1, %v785_v18 }
 0x2bb PF: > { %p1407_p13 = scmp.ne.s32.totalorder %s1554_s30, 3 }
 0x2bc   : > { %v1578_v19 = vmov (!%p1407_p13), 0.0  }
 0x2bd   : > { %792 = sbr.rel (%p1407_p13) target bundleno = 708 (0x2c4), region = 72  ;;  %794 = vst.msk [vmem:[#allocation2 + $0xa8] sm:$0xff] (!%p1407_p13), %vm502_vm1, %v1578_v19  ;;  %795 = vst.msk [vmem:[#allocation2 + $0xb0] sm:$0xff] (!%p1407_p13), %vm502_vm1, %v1578_v19 }
 0x2c4 PF: > { %v1530_v20 = vld [vmem:[%s2062_s7] sm:$0xff]   ;;  %v811_v21 = vlaneseq  ;;  %v1531_v22 = vld [vmem:[%s2062_s7 + $0x8] sm:$0xff]   ;;  %v832_v33 = vld [vmem:[#allocation2 + $0x10] sm:$0xff] }
 0x2c5   : > { %1463 = vmatprep.subr.bf16.mxu0 %v1530_v20  ;;  %1477 = vmatprep.subr.bf16.mxu1 %v1530_v20  ;;  %v796_v24 = vld [vmem:[%s2060_s5] sm:$0x7]  ;;  %v797_v25 = vld [vmem:[%s2060_s5 + $0x4] sm:$0x7]  ;;  %v798_v26 = vld [vmem:[%s2060_s5 + $0x8] sm:$0x7] }
 0x2c6   : > { %1464 = vmatpush3.bf16.msra.mxu0 %v1530_v20  ;;  %1479 = vmatpush3.bf16.msra.mxu1 %v1530_v20  ;;  %v812_v23 = vshrl.u32 %v811_v21, 7  ;;  %v803_v27 = vld [vmem:[#allocation2 + $0x7] sm:$0xff]  ;;  %v804_v31 = vld [vmem:[#allocation2 + $0xf] sm:$0xff] }
 0x2c7   : > { %1465 = vmatprep.subr.bf16.mxu0 %v1531_v22  ;;  %1478 = vmatprep.subr.bf16.mxu1 %v1531_v22  ;;  %v831_v32 = vld [vmem:[#allocation2 + $0x8] sm:$0xff]  ;;  %v860_v37 = vld [vmem:[#allocation2 + $0x11] sm:$0xff] }
 0x2c8   : > { %v813_v28 = vsub.s32 0, %v812_v23  ;;  %v841_v29 = vsub.s32 1, %v812_v23  ;;  %v869_v30 = vsub.s32 2, %v812_v23  ;;  %v859_v36 = vld [vmem:[#allocation2 + $0x9] sm:$0xff]  ;;  %v1832_v56 = vld [vmem:[#allocation2 + $0x31] sm:$0xff] }
 0x2c9   : > { %v1804_v39 = vld [vmem:[#allocation2 + $0x27] sm:$0xff]  ;;  %v1818_v48 = vld [vmem:[#allocation2 + $0x2f] sm:$0xff] }
 0x2ca   : > { %1466 = vmatpush3.bf16.msra.mxu0 %v1531_v22  ;;  %1480 = vmatpush3.bf16.msra.mxu1 %v1531_v22  ;;  %v1798_v34 = vrot.slane %v796_v24, %v813_v28  ;;  %v1800_v35 = vrot.slane %v796_v24, %v841_v29  ;;  %v1802_v38 = vrot.slane %v796_v24, %v869_v30  ;;  %v1820_v49 = vld [vmem:[#allocation2 + $0x28] sm:$0xff]  ;;  %v1822_v50 = vld [vmem:[#allocation2 + $0x30] sm:$0xff] }
 0x2cb   : > { %v1806_v40 = vrot.slane %v797_v25, %v813_v28  ;;  %v1808_v41 = vrot.slane %v797_v25, %v841_v29  ;;  %v1810_v42 = vrot.slane %v797_v25, %v869_v30  ;;  %v1812_v43 = vrot.slane %v798_v26, %v813_v28  ;;  %v1830_v55 = vld [vmem:[#allocation2 + $0x29] sm:$0xff]  ;;  %v1860_v10 = vld [vmem:[#allocation2 + $0x51] sm:$0xff] }
 0x2cc   : > { %v815_v44 = vmul.f32 %v1798_v34, %v803_v27  ;;  %v816_v45 = vmul.f32 %v1798_v34, %v804_v31  ;;  %v843_v46 = vmul.f32 %v1800_v35, %v831_v32  ;;  %v844_v47 = vmul.f32 %v1800_v35, %v832_v33  ;;  %v1834_v57 = vld [vmem:[#allocation2 + $0x47] sm:$0xff]  ;;  %v1840_v62 = vld [vmem:[#allocation2 + $0x4f] sm:$0xff] }
 0x2cd   : > { %v871_v51 = vmul.f32 %v1802_v38, %v859_v36  ;;  %v872_v52 = vmul.f32 %v1802_v38, %v860_v37  ;;  %v899_v53 = vmul.f32 %v1806_v40, %v1804_v39  ;;  %v900_v54 = vmul.f32 %v1806_v40, %v1818_v48  ;;  %v1842_v63 = vld [vmem:[#allocation2 + $0x48] sm:$0xff]  ;;  %v1844_v0 = vld [vmem:[#allocation2 + $0x50] sm:$0xff] }
 0x2ce   : > { %v851_v58 = vadd.f32 %v843_v46, %v815_v44  ;;  %v852_v59 = vadd.f32 %v844_v47, %v816_v45  ;;  %v927_v60 = vmul.f32 %v1808_v41, %v1820_v49  ;;  %v928_v61 = vmul.f32 %v1808_v41, %v1822_v50  ;;  %v1858_v9 = vld [vmem:[#allocation2 + $0x49] sm:$0xff] }
 0x2cf   : > { %v955_v1 = vmul.f32 %v1810_v42, %v1830_v55  ;;  %v956_v2 = vmul.f32 %v1810_v42, %v1832_v56  ;;  %v986_v3 = vmul.f32 %v1812_v43, %v1834_v57  ;;  %v987_v4 = vmul.f32 %v1812_v43, %v1840_v62  ;;  %v1878_v23 = vld [vmem:[#allocation2 + $0x67] sm:$0xff]  ;;  %v1884_v28 = vld [vmem:[#allocation2 + $0x6f] sm:$0xff] }
 0x2d0   : > { %v879_v5 = vadd.f32 %v871_v51, %v851_v58  ;;  %v880_v6 = vadd.f32 %v872_v52, %v852_v59  ;;  %v1854_v7 = vrot.slane %v798_v26, %v841_v29  ;;  %v1856_v8 = vrot.slane %v798_v26, %v869_v30  ;;  %v1886_v29 = vld [vmem:[#allocation2 + $0x68] sm:$0xff]  ;;  %v1888_v30 = vld [vmem:[#allocation2 + $0x70] sm:$0xff] }
 0x2d1   : > { %v819_v11 = vmul.f32 %v1834_v57, %v1798_v34  ;;  %v820_v12 = vmul.f32 %v1840_v62, %v1798_v34  ;;  %v847_v13 = vmul.f32 %v1842_v63, %v1800_v35  ;;  %v848_v14 = vmul.f32 %v1844_v0, %v1800_v35  ;;  %v1898_v37 = vld [vmem:[#allocation2 + $0x69] sm:$0xff]  ;;  %v1900_v51 = vld [vmem:[#allocation2 + $0x71] sm:$0xff] }
 0x2d2   : > { %v907_v15 = vadd.f32 %v899_v53, %v879_v5  ;;  %v908_v16 = vadd.f32 %v900_v54, %v880_v6  ;;  %v1014_v17 = vmul.f32 %v1854_v7, %v1842_v63  ;;  %v1015_v18 = vmul.f32 %v1854_v7, %v1844_v0  ;;  %v1902_v52 = vld [vmem:[#allocation2 + $0x87] sm:$0xff]  ;;  %v1904_v53 = vld [vmem:[#allocation2 + $0x8f] sm:$0xff] }
 0x2d3   : > { %v1042_v19 = vmul.f32 %v1856_v8, %v1858_v9  ;;  %v1043_v20 = vmul.f32 %v1856_v8, %v1860_v10  ;;  %v855_v21 = vadd.f32 %v847_v13, %v819_v11  ;;  %v856_v22 = vadd.f32 %v848_v14, %v820_v12  ;;  %v1916_v11 = vld [vmem:[#allocation2 + $0x90] sm:$0xff] }
 0x2d4   : > { %v935_v24 = vadd.f32 %v927_v60, %v907_v15  ;;  %v936_v25 = vadd.f32 %v928_v61, %v908_v16  ;;  %v875_v26 = vmul.f32 %v1858_v9, %v1802_v38  ;;  %v876_v27 = vmul.f32 %v1860_v10, %v1802_v38  ;;  %v1914_v61 = vld [vmem:[#allocation2 + $0x88] sm:$0xff]  ;;  %v1920_v13 = vld [vmem:[#allocation2 + $0x91] sm:$0xff] }
 0x2d5   : > { %v903_v31 = vmul.f32 %v1806_v40, %v1878_v23  ;;  %v904_v32 = vmul.f32 %v1806_v40, %v1884_v28  ;;  %v931_v33 = vmul.f32 %v1808_v41, %v1886_v29  ;;  %v932_v36 = vmul.f32 %v1808_v41, %v1888_v30  ;;  %v1918_v12 = vld [vmem:[#allocation2 + $0x89] sm:$0xff] }
 0x2d6   : > { %v963_v44 = vadd.f32 %v955_v1, %v935_v24  ;;  %v964_v45 = vadd.f32 %v956_v2, %v936_v25  ;;  %v883_v46 = vadd.f32 %v875_v26, %v855_v21  ;;  %v884_v47 = vadd.f32 %v876_v27, %v856_v22  ;;  %v1933_v25 = vld [vmem:[%s2061_s6] ss:$0 sm:$0xff] }
 0x2d7   : > { %v959_v54 = vmul.f32 %v1810_v42, %v1898_v37  ;;  %v960_v58 = vmul.f32 %v1810_v42, %v1900_v51  ;;  %v990_v59 = vmul.f32 %v1812_v43, %v1902_v52  ;;  %v991_v60 = vmul.f32 %v1812_v43, %v1904_v53 }
 0x2d8   : > { %v994_v1 = vadd.f32 %v986_v3, %v963_v44  ;;  %v995_v2 = vadd.f32 %v987_v4, %v964_v45  ;;  %v911_v5 = vadd.f32 %v903_v31, %v883_v46  ;;  %v912_v6 = vadd.f32 %v904_v32, %v884_v47 }
 0x2d9   : > { %v1018_v14 = vmul.f32 %v1854_v7, %v1914_v61  ;;  %v1019_v15 = vmul.f32 %v1854_v7, %v1916_v11  ;;  %v1046_v16 = vmul.f32 %v1856_v8, %v1918_v12  ;;  %v1047_v3 = vmul.f32 %v1856_v8, %v1920_v13 }
 0x2da   : > { %v1022_v4 = vadd.f32 %v1014_v17, %v994_v1  ;;  %v1023_v21 = vadd.f32 %v1015_v18, %v995_v2  ;;  %v939_v22 = vadd.f32 %v931_v33, %v911_v5  ;;  %v940_v24 = vadd.f32 %v932_v36, %v912_v6 }
 0x2db   : > { %v817_v26 = vmul.f32 %v1804_v39, %v1798_v34  ;;  %v818_v27 = vmul.f32 %v1818_v48, %v1798_v34  ;;  %v845_v31 = vmul.f32 %v1820_v49, %v1800_v35  ;;  %v846_v17 = vmul.f32 %v1822_v50, %v1800_v35 }
 0x2dc   : > { %v1050_v18 = vadd.f32 %v1042_v19, %v1022_v4  ;;  %v1051_v32 = vadd.f32 %v1043_v20, %v1023_v21  ;;  %v967_v33 = vadd.f32 %v959_v54, %v939_v22  ;;  %v968_v36 = vadd.f32 %v960_v58, %v940_v24 }
 0x2dd   : > { %v853_v44 = vadd.f32 %v845_v31, %v817_v26  ;;  %v854_v45 = vadd.f32 %v846_v17, %v818_v27  ;;  %v873_v46 = vmul.f32 %v1830_v55, %v1802_v38  ;;  %v874_v39 = vmul.f32 %v1832_v56, %v1802_v38 }
 0x2de   : > { %v1064_v48 = vadd.f32 %v1933_v25, %v1050_v18  ;;  %v1065_v47 = vadd.f32 %v1933_v25, %v1051_v32  ;;  %v998_v49 = vadd.f32 %v990_v59, %v967_v33  ;;  %v999_v1 = vadd.f32 %v991_v60, %v968_v36 }
 0x2df   : > { %v881_v2 = vadd.f32 %v873_v46, %v853_v44  ;;  %v882_v50 = vadd.f32 %v874_v39, %v854_v45  ;;  %v901_v19 = vmul.f32 %v1834_v57, %v1806_v40  ;;  %v902_v20 = vmul.f32 %v1840_v62, %v1806_v40 }
 0x2e0   : > { %v1072_v54 = vmax.f32 %v1064_v48, 0.0  ;;  %v1073_v58 = vmax.f32 %v1065_v47, 0.0  ;;  %v1026_v55 = vadd.f32 %v1018_v14, %v998_v49  ;;  %v1027_v5 = vadd.f32 %v1019_v15, %v999_v1 }
 0x2e1   : > { %v909_v6 = vadd.f32 %v901_v19, %v881_v2  ;;  %v910_v56 = vadd.f32 %v902_v20, %v882_v50  ;;  %v929_v4 = vmul.f32 %v1842_v63, %v1808_v41  ;;  %v930_v59 = vmul.f32 %v1844_v0, %v1808_v41 }
 0x2e2   : > { %v1080_v60 = vmin.f32 %v1072_v54, 6.0  ;;  %v1081_v21 = vmin.f32 %v1073_v58, 6.0  ;;  %v1054_v22 = vadd.f32 %v1046_v16, %v1026_v55  ;;  %v1055_v24 = vadd.f32 %v1047_v3, %v1027_v5 }
 0x2e3   : > { %v937_v57 = vadd.f32 %v929_v4, %v909_v6  ;;  %v938_v26 = vadd.f32 %v930_v59, %v910_v56  ;;  %v957_v62 = vmul.f32 %v1858_v9, %v1810_v42  ;;  %v958_v14 = vmul.f32 %v1860_v10, %v1810_v42  ;;  %v1008_v59 = vld [vmem:[#allocation2 + $0xa8] sm:$0xff] }
 0x2e4   : > { %v1088_v15 = vpack.c.bf16 %v1081_v21, %v1080_v60  ;;  %v1068_v27 = vadd.f32 %v1933_v25, %v1054_v22  ;;  %v1069_v63 = vadd.f32 %v1933_v25, %v1055_v24  ;;  %v988_v0 = vmul.f32 %v1812_v43, %v1878_v23  ;;  %v1009_v22 = vld [vmem:[#allocation2 + $0xb0] sm:$0xff] }
 0x2e5   : > { %v965_v31 = vadd.f32 %v957_v62, %v937_v57  ;;  %v966_v17 = vadd.f32 %v958_v14, %v938_v26  ;;  %v989_v16 = vmul.f32 %v1812_v43, %v1884_v28  ;;  %v1016_v3 = vmul.f32 %v1854_v7, %v1886_v29  ;;  %v1036_v26 = vld [vmem:[#allocation2 + $0xa9] sm:$0xff]  ;;  %v1037_v14 = vld [vmem:[#allocation2 + $0xb1] sm:$0xff] }
 0x2e6   : > { %1467 = vmatprep.mubr.msk.bf16.mxu0 %vm502_vm1, %v1088_v15  ;;  %v1076_v9 = vmax.f32 %v1068_v27, 0.0  ;;  %v1077_v10 = vmax.f32 %v1069_v63, 0.0  ;;  %v1017_v18 = vmul.f32 %v1854_v7, %v1888_v30  ;;  %v1044_v32 = vmul.f32 %v1856_v8, %v1898_v37 }
 0x2e7   : > { %v996_v33 = vadd.f32 %v988_v0, %v965_v31  ;;  %v997_v36 = vadd.f32 %v989_v16, %v966_v17  ;;  %v1045_v44 = vmul.f32 %v1856_v8, %v1900_v51  ;;  %v821_v45 = vmul.f32 %v1878_v23, %v1798_v34 }
 0x2e8   : > { %v1084_v46 = vmin.f32 %v1076_v9, 6.0  ;;  %v1085_v39 = vmin.f32 %v1077_v10, 6.0  ;;  %v822_v48 = vmul.f32 %v1884_v28, %v1798_v34  ;;  %v849_v47 = vmul.f32 %v1886_v29, %v1800_v35 }
 0x2e9   : > { %v1024_v49 = vadd.f32 %v1016_v3, %v996_v33  ;;  %v1025_v1 = vadd.f32 %v1017_v18, %v997_v36  ;;  %v850_v2 = vmul.f32 %v1888_v30, %v1800_v35  ;;  %v877_v50 = vmul.f32 %v1898_v37, %v1802_v38 }
 0x2ea   : > { %v1090_v19 = vpack.c.bf16 %v1085_v39, %v1084_v46  ;;  %v857_v20 = vadd.f32 %v849_v47, %v821_v45  ;;  %v878_v23 = vmul.f32 %v1900_v51, %v1802_v38  ;;  %v905_v54 = vmul.f32 %v1902_v52, %v1806_v40  ;;  %v980_v52 = vld [vmem:[#allocation2 + $0xa7] sm:$0xff]  ;;  %v1193_v45 = vld [vmem:[%s1702_s29 + $0x10] sm:$0xff] }
 0x2eb   : > { %v1052_v34 = vadd.f32 %v1044_v32, %v1024_v49  ;;  %v1053_v28 = vadd.f32 %v1045_v44, %v1025_v1  ;;  %v858_v58 = vadd.f32 %v850_v2, %v822_v48  ;;  %v906_v29 = vmul.f32 %v1904_v53, %v1806_v40  ;;  %v981_v40 = vld [vmem:[#allocation2 + $0xaf] sm:$0xff]  ;;  %v1194_v49 = vld [vmem:[%s1702_s29 + $0x18] sm:$0xff] }
 0x2ec   : > { %1471 = vmatprep.mubr.msk.bf16.mxu1 %vm502_vm1, %v1090_v19  ;;  %v885_v35 = vadd.f32 %v877_v50, %v857_v20  ;;  %v933_v30 = vmul.f32 %v1914_v61, %v1808_v41  ;;  %v934_v51 = vmul.f32 %v1916_v11, %v1808_v41  ;;  %v961_v6 = vmul.f32 %v1918_v12, %v1810_v42  ;;  %v1192_v19 = vld [vmem:[%s1702_s29 + $0x8] sm:$0xff] }
 0x2ed   : > { %v1066_v37 = vadd.f32 %v1933_v25, %v1052_v34  ;;  %v1067_v55 = vadd.f32 %v1933_v25, %v1053_v28  ;;  %v886_v38 = vadd.f32 %v878_v23, %v858_v58  ;;  %v962_v61 = vmul.f32 %v1920_v13, %v1810_v42  ;;  %v1197_v58 = vld [vmem:[%s1702_s29 + $0x30] sm:$0xff] }
 0x2ee   : > { %v913_v5 = vadd.f32 %v905_v54, %v885_v35  ;;  %v992_v21 = vmul.f32 %v1812_v43, %v980_v52  ;;  %v993_v11 = vmul.f32 %v1812_v43, %v981_v40  ;;  %v1020_v12 = vmul.f32 %v1854_v7, %v1008_v59 }
 0x2ef   : > { %v1074_v53 = vmax.f32 %v1066_v37, 0.0  ;;  %v1075_v56 = vmax.f32 %v1067_v55, 0.0  ;;  %v914_v4 = vadd.f32 %v906_v29, %v886_v38  ;;  %v1021_v63 = vmul.f32 %v1854_v7, %v1009_v22  ;;  %v1198_v38 = vld [vmem:[%s1702_s29 + $0x38] sm:$0xff] }
 0x2f0   : > { %v941_v60 = vadd.f32 %v933_v30, %v913_v5  ;;  %v1048_v13 = vmul.f32 %v1856_v8, %v1036_v26  ;;  %v1049_v31 = vmul.f32 %v1856_v8, %v1037_v14  ;;  %v1409_v8 = vld [vmem:[%s2063_s8] ss:$0 sm:$0xff] }
 0x2f1   : > { %v1082_v24 = vmin.f32 %v1074_v53, 6.0  ;;  %v1083_v57 = vmin.f32 %v1075_v56, 6.0  ;;  %v942_v41 = vadd.f32 %v934_v51, %v914_v4  ;;  %v1195_v30 = vld [vmem:[%s1702_s29 + $0x20] sm:$0xff] }
 0x2f2   : > { %v969_v62 = vadd.f32 %v961_v6, %v941_v60  ;;  %v1196_v6 = vld [vmem:[%s1702_s29 + $0x28] sm:$0xff] }
 0x2f3   : > { %v1089_v15 = vpack.c.bf16 %v1083_v57, %v1082_v24  ;;  %v970_v27 = vadd.f32 %v962_v61, %v942_v41 }
 0x2f4   : > { %v1000_v42 = vadd.f32 %v992_v21, %v969_v62 }
 0x2f5   : > { %1468 = vmatmul.mubr.msk.bf16.vlgmr.msra.gmra.mrb[0].mxu0 %vm502_vm1, %v1089_v15  ;;  %v1001_v0 = vadd.f32 %v993_v11, %v970_v27 }
 0x2f6   : > { %v1028_v17 = vadd.f32 %v1020_v12, %v1000_v42 }
 0x2f7   : > { %v1029_v43 = vadd.f32 %v1021_v63, %v1001_v0 }
 0x2f8   : > { %v1056_v16 = vadd.f32 %v1048_v13, %v1028_v17 }
 0x2f9   : > { %v1057_v3 = vadd.f32 %v1049_v31, %v1029_v43 }
 0x2fa   : > { %v1070_v9 = vadd.f32 %v1933_v25, %v1056_v16 }
 0x2fb   : > { %v1071_v10 = vadd.f32 %v1933_v25, %v1057_v3  ;;  %v1191_v25 = vld [vmem:[%s1702_s29] sm:$0xff] }
 0x2fc   : > { %v1078_v7 = vmax.f32 %v1070_v9, 0.0 }
 0x2fd   : > { %v1079_v18 = vmax.f32 %v1071_v10, 0.0 }
 0x2fe   : > { %v1086_v32 = vmin.f32 %v1078_v7, 6.0 }
 0x2ff   : > { %v1087_v33 = vmin.f32 %v1079_v18, 6.0 }
 0x301   : > { %v1091_v36 = vpack.c.bf16 %v1087_v33, %v1086_v32 }
 0x303   : > { %1472 = vmatmul.mubr.msk.bf16.vlgmr.msra.gmra.mrb[0].mxu1 %vm502_vm1, %v1091_v36 }
 0x3c8   : > { %v1469_v44 = vpop.f32.mrb[0].mxu0 }
 0x3c9   : > { %v1169_v46 = vadd.f32 %v1469_v44, %v1409_v8  ;;  %v1160_v39 = vpop.f32.mrb[1].mxu0 }
 0x3ca   : > { %v1161_v48 = vadd.f32 %v1409_v8, %v1160_v39  ;;  %v1470_v47 = vpop.f32.mrb[2].mxu0 }
 0x3cb   : > { %v1201_v1 = vadd.f32 %v1193_v45, %v1169_v46  ;;  %v1172_v2 = vadd.f32 %v1470_v47, %v1409_v8  ;;  %v1163_v50 = vpop.f32.mrb[3].mxu0 }
 0x3cc   : > { %v1199_v20 = vadd.f32 %v1191_v25, %v1161_v48  ;;  %v1164_v23 = vadd.f32 %v1409_v8, %v1163_v50 }
 0x3cd   : > { %1210 = vst.msk [vmem:[%s1707_s17 + $0x10] sm:$0xff] %vm537_vm2, %v1201_v1  ;;  %v1202_v54 = vadd.f32 %v1194_v49, %v1172_v2 }
 0x3ce   : > { %1208 = vst.msk [vmem:[%s1707_s17] sm:$0xff] %vm537_vm2, %v1199_v20  ;;  %v1200_v34 = vadd.f32 %v1192_v19, %v1164_v23 }
 0x3cf   : > { %1211 = vst.msk [vmem:[%s1707_s17 + $0x18] sm:$0xff] %vm537_vm2, %v1202_v54 }
 0x3d0   : > { %1209 = vst.msk [vmem:[%s1707_s17 + $0x8] sm:$0xff] %vm537_vm2, %v1200_v34 }
 0x3d6   : > { %v1473_v28 = vpop.f32.mrb[0].mxu1 }
 0x3d7   : > { %v1185_v29 = vadd.f32 %v1473_v28, %v1409_v8  ;;  %v1176_v35 = vpop.f32.mrb[1].mxu1 }
 0x3d8   : > { %v1177_v37 = vadd.f32 %v1409_v8, %v1176_v35  ;;  %v1474_v55 = vpop.f32.mrb[2].mxu1 }
 0x3d9   : > { %v1205_v51 = vadd.f32 %v1197_v58, %v1185_v29  ;;  %v1188_v52 = vadd.f32 %v1474_v55, %v1409_v8  ;;  %v1179_v5 = vpop.f32.mrb[3].mxu1 }
 0x3da   : > { %v1203_v40 = vadd.f32 %v1195_v30, %v1177_v37  ;;  %v1180_v53 = vadd.f32 %v1409_v8, %v1179_v5 }
 0x3db   : > { %1214 = vst.msk [vmem:[%s1707_s17 + $0x30] sm:$0xff] %vm537_vm2, %v1205_v51  ;;  %v1206_v56 = vadd.f32 %v1198_v38, %v1188_v52 }
 0x3dc   : > { %1212 = vst.msk [vmem:[%s1707_s17 + $0x20] sm:$0xff] %vm537_vm2, %v1203_v40  ;;  %v1204_v4 = vadd.f32 %v1196_v6, %v1180_v53 }
 0x3dd   : > { %1215 = vst.msk [vmem:[%s1707_s17 + $0x38] sm:$0xff] %vm537_vm2, %v1206_v56 }
 0x3de   : > { %1213 = vst.msk [vmem:[%s1707_s17 + $0x28] sm:$0xff] %vm537_vm2, %v1204_v4 }
 0x3df PF: > { %s19_s13 = sadd.s32 1, %s1570_s13   ;;  %s2071_s29 = sld [smem:[#allocation3_spill]] }
 0x3e0   : > { %p16_p0 = scmp.ge.s32.totalorder %s19_s13, 10   ;;  %s2072_s30 = smov %s1562_s11 }
 0x3e1   : > { %s2073_s10 = smov %s1566_s12  ;;  %s2074_s11 = smov %s2077_s14 }
 0x3e2   :  { %18 = sbr.rel (!%p16_p0) target bundleno = 4 (0x4), region = 115 }
 0x3e5   : > { %s2075_s12 = smov %s2071_s29 }

</bundles_post_ra>
